<compile_context>
chip_gen: v5e
topology: v5e:2x2
jax: 0.10.0
libtpu: 0.0.40
codegen_flags: <defaults>
</compile_context>

<pallas_src>
import functools
import math

import jax
import jax.numpy as jnp
from jax.experimental import pallas as pl
from jax.experimental.pallas import tpu as pltpu

EPS = 1e-6
_SUBLANE = 8
_MAX_ROW_TILE = 512                      # ~85% of HBM roofline for elementwise f32 streams (v6e data)
_VMEM_BUDGET_BYTES = 12 * 1024 * 1024    # conservative: fits v5e/v6e/v7x scoped-VMEM defaults


# ---------------------------------------------------------------------------
# Tiling helpers
# ---------------------------------------------------------------------------
def _round_up(x, m):
    return (x + m - 1) // m * m


def _choose_row_tile(rows, d, n_streams, itemsize=4):
    """Pick a sublane-aligned row tile sized against a conservative VMEM budget."""
    per_row = max(1, n_streams * 2 * d * itemsize)        # double-buffered pipelined streams
    tile = min(_MAX_ROW_TILE, max(_SUBLANE, _VMEM_BUDGET_BYTES // per_row))
    tile = max(_SUBLANE, (tile // _SUBLANE) * _SUBLANE)
    tile = min(tile, _round_up(rows, _SUBLANE))
    # Prefer >=2 grid steps so both TensorCores of a v7x chip get work.
    if tile > _SUBLANE and _round_up(rows, tile) // tile < 2:
        half = max(_SUBLANE, ((tile // 2) // _SUBLANE) * _SUBLANE)
        if _round_up(rows, half) // half >= 2:
            tile = half
    return tile


def _pad_rows(a, rows_padded):
    pad = rows_padded - a.shape[0]
    if pad == 0:
        return a
    return jnp.pad(a, ((0, pad), (0, 0)))


def _dropout_threshold(p):
    # keep iff (uint32 bits >= threshold)  =>  P(keep) = 1 - p
    return min(int(round(p * 2.0 ** 32)), 2 ** 32 - 1)


def _dropout_bits(rng_key, rows, d):
    # Deterministic, tile/grid-shape independent dropout stream.
    return jax.random.bits(rng_key, (rows, d), dtype=jnp.uint32)


# ---------------------------------------------------------------------------
# LayerNormalization (torch semantics: unbiased std, eps added to std)
# ---------------------------------------------------------------------------
def _ln_block(x, alpha, bias):
    xf = x.astype(jnp.float32)
    d = xf.shape[-1]
    mean = jnp.mean(xf, axis=-1, keepdims=True)
    diff = xf - mean
    var = jnp.sum(diff * diff, axis=-1, keepdims=True) * (1.0 / (d - 1))
    inv = 1.0 / (jnp.sqrt(var) + EPS)
    return alpha * (diff * inv) + bias


def _layernorm_kernel(alpha_ref, bias_ref, x_ref, o_ref):
    o_ref[...] = _ln_block(x_ref[...], alpha_ref[0], bias_ref[0]).astype(o_ref.dtype)


def layer_norm(x, alpha, bias):
    orig_shape = x.shape
    d = orig_shape[-1]
    rows = math.prod(orig_shape[:-1])
    x2 = x.reshape(rows, d)
    tile = _choose_row_tile(rows, d, n_streams=2)
    rows_p = _round_up(rows, tile)
    out = pl.pallas_call(
        _layernorm_kernel,
        out_shape=jax.ShapeDtypeStruct((rows_p, d), x.dtype),
        grid=(rows_p // tile,),
        in_specs=[
            pl.BlockSpec(memory_space=pltpu.MemorySpace.SMEM),   # alpha (1,)
            pl.BlockSpec(memory_space=pltpu.MemorySpace.SMEM),   # bias  (1,)
            pl.BlockSpec((tile, d), lambda i: (i, 0)),
        ],
        out_specs=pl.BlockSpec((tile, d), lambda i: (i, 0)),
        compiler_params=pltpu.CompilerParams(dimension_semantics=("parallel",)),
    )(alpha, bias, x2 if rows_p == rows else _pad_rows(x2, rows_p))
    return out[:rows].reshape(orig_shape)


# ---------------------------------------------------------------------------
# Residual + inverted dropout:  out = x + dropout_p(y)
# ---------------------------------------------------------------------------
def _residual_add_kernel(x_ref, y_ref, o_ref):
    o_ref[...] = (x_ref[...] + y_ref[...]).astype(o_ref.dtype)


def _residual_dropout_kernel(x_ref, y_ref, bits_ref, o_ref, *, threshold, scale):
    x = x_ref[...]
    y = y_ref[...]
    keep = bits_ref[...] >= jnp.uint32(threshold)          # integer-threshold mask
    dropped = jnp.where(keep, y * jnp.asarray(scale, y.dtype), jnp.zeros((), y.dtype))
    o_ref[...] = (x + dropped).astype(o_ref.dtype)


def residual_dropout_add(x, y, p, rng_key=None):
    p = float(p)
    if p >= 1.0:                                           # everything dropped
        return x
    orig_shape = x.shape
    d = orig_shape[-1]
    rows = math.prod(orig_shape[:-1])
    x2 = x.reshape(rows, d)
    y2 = y.reshape(rows, d)

    if p <= 0.0:                                           # trace-time fast path: no PRNG / mask
        tile = _choose_row_tile(rows, d, n_streams=3)
        rows_p = _round_up(rows, tile)
        out = pl.pallas_call(
            _residual_add_kernel,
            out_shape=jax.ShapeDtypeStruct((rows_p, d), x.dtype),
            grid=(rows_p // tile,),
            in_specs=[pl.BlockSpec((tile, d), lambda i: (i, 0)),
                      pl.BlockSpec((tile, d), lambda i: (i, 0))],
            out_specs=pl.BlockSpec((tile, d), lambda i: (i, 0)),
            compiler_params=pltpu.CompilerParams(dimension_semantics=("parallel",)),
        )(_pad_rows(x2, rows_p), _pad_rows(y2, rows_p))
        return out[:rows].reshape(orig_shape)

    if rng_key is None:
        raise ValueError("rng_key is required when 0 < dropout_p < 1")

    bits = _dropout_bits(rng_key, rows, d)
    tile = _choose_row_tile(rows, d, n_streams=4)
    rows_p = _round_up(rows, tile)
    kernel = functools.partial(_residual_dropout_kernel,
                               threshold=_dropout_threshold(p),
                               scale=1.0 / (1.0 - p))
    out = pl.pallas_call(
        kernel,
        out_shape=jax.ShapeDtypeStruct((rows_p, d), x.dtype),
        grid=(rows_p // tile,),
        in_specs=[pl.BlockSpec((tile, d), lambda i: (i, 0)),
                  pl.BlockSpec((tile, d), lambda i: (i, 0)),
                  pl.BlockSpec((tile, d), lambda i: (i, 0))],
        out_specs=pl.BlockSpec((tile, d), lambda i: (i, 0)),
        compiler_params=pltpu.CompilerParams(dimension_semantics=("parallel",)),
    )(_pad_rows(x2, rows_p), _pad_rows(y2, rows_p), _pad_rows(bits, rows_p))
    return out[:rows].reshape(orig_shape)


# ---------------------------------------------------------------------------
# General composition (sublayer is an arbitrary JAX callable, external glue)
# ---------------------------------------------------------------------------
def residual_connection(x, sublayer, alpha, bias, dropout_p, rng_key=None):
    normed = layer_norm(x, alpha, bias)
    sub_out = sublayer(normed)
    return residual_dropout_add(x, sub_out, dropout_p, rng_key)


# ---------------------------------------------------------------------------
# Fused path for the common case: sublayer = Linear(D, D)
#   single pallas_call: LN prologue -> MXU matmul -> dropout + residual epilogue
# ---------------------------------------------------------------------------
def _fused_kernel_no_dropout(alpha_ref, bias_ref, x_ref, w_ref, b_ref, o_ref):
    x = x_ref[...]
    n = _ln_block(x, alpha_ref[0], bias_ref[0])
    y = jnp.dot(n.astype(w_ref.dtype), w_ref[...], preferred_element_type=jnp.float32)
    y = y + b_ref[...].astype(jnp.float32)
    o_ref[...] = (x.astype(jnp.float32) + y).astype(o_ref.dtype)


def _fused_kernel_dropout(alpha_ref, bias_ref, x_ref, w_ref, b_ref, bits_ref, o_ref,
                          *, threshold, scale):
    x = x_ref[...]
    n = _ln_block(x, alpha_ref[0], bias_ref[0])
    y = jnp.dot(n.astype(w_ref.dtype), w_ref[...], preferred_element_type=jnp.float32)
    y = y + b_ref[...].astype(jnp.float32)
    keep = bits_ref[...] >= jnp.uint32(threshold)
    y = jnp.where(keep, y * jnp.float32(scale), 0.0)
    o_ref[...] = (x.astype(jnp.float32) + y).astype(o_ref.dtype)


def residual_connection_fused_linear(x, w, b_lin, alpha, bias, dropout_p, rng_key=None):
    p = float(dropout_p)
    if p >= 1.0:
        return x
    orig_shape = x.shape
    d = orig_shape[-1]
    rows = math.prod(orig_shape[:-1])
    x2 = x.reshape(rows, d)
    b2 = b_lin.reshape(1, d)

    # TODO(synk): tile the contraction (K) axis as an extra grid dim when D*D*4B
    # no longer fits comfortably in VMEM next to the row tiles.
    tile = _choose_row_tile(rows, d, n_streams=4)
    rows_p = _round_up(rows, tile)

    in_specs = [
        pl.BlockSpec(memory_space=pltpu.MemorySpace.SMEM),       # alpha (1,)
        pl.BlockSpec(memory_space=pltpu.MemorySpace.SMEM),       # bias  (1,)
        pl.BlockSpec((tile, d), lambda i: (i, 0)),               # x tile
        pl.BlockSpec((d, d), lambda i: (0, 0)),                  # W (resident)
        pl.BlockSpec((1, d), lambda i: (0, 0)),                  # b (resident)
    ]
    args = [alpha, bias, _pad_rows(x2, rows_p), w, b2]

    if p <= 0.0:
        kernel = _fused_kernel_no_dropout
    else:
        if rng_key is None:
            raise ValueError("rng_key is required when 0 < dropout_p < 1")
        kernel = functools.partial(_fused_kernel_dropout,
                                   threshold=_dropout_threshold(p),
                                   scale=1.0 / (1.0 - p))
        in_specs.append(pl.BlockSpec((tile, d), lambda i: (i, 0)))
        args.append(_pad_rows(_dropout_bits(rng_key, rows, d), rows_p))

    out = pl.pallas_call(
        kernel,
        out_shape=jax.ShapeDtypeStruct((rows_p, d), x.dtype),
        grid=(rows_p // tile,),
        in_specs=in_specs,
        out_specs=pl.BlockSpec((tile, d), lambda i: (i, 0)),
        compiler_params=pltpu.CompilerParams(dimension_semantics=("parallel",)),
    )(*args)
    return out[:rows].reshape(orig_shape)


# ---------------------------------------------------------------------------
# Demo / correctness check
# ---------------------------------------------------------------------------
if __name__ == "__main__":
    B, S, D = 2, 8, 32
    key = jax.random.PRNGKey(0)
    kx, kw, kb, kdrop = jax.random.split(key, 4)

    x = jax.random.normal(kx, (B, S, D), dtype=jnp.float32)

    # LayerNormalization parameters (alpha=1, bias=0, as in __init__)
    alpha = jnp.ones((1,), dtype=jnp.float32)
    bias = jnp.zeros((1,), dtype=jnp.float32)

    # Example sublayer: Linear(D, D)
    W = jax.random.normal(kw, (D, D), dtype=jnp.float32) * 0.05
    b_lin = jax.random.normal(kb, (D,), dtype=jnp.float32) * 0.05
    sublayer = lambda h: jnp.dot(h, W) + b_lin

    # --- p = 0 (dropout = identity) vs. pure-JAX reference ---
    def ref_layernorm(v):
        mean = v.mean(axis=-1, keepdims=True)
        std = jnp.sqrt(jnp.sum((v - mean) ** 2, axis=-1, keepdims=True) / (D - 1))
        return alpha[0] * (v - mean) / (std + EPS) + bias[0]

    ref_p0 = x + sublayer(ref_layernorm(x))

    out_p0 = residual_connection(x, sublayer, alpha, bias, dropout_p=0.0)
    jax.block_until_ready(out_p0)
    assert jnp.allclose(out_p0, ref_p0, atol=1e-4, rtol=1e-4), "composed p=0 mismatch"

    fused_p0 = residual_connection_fused_linear(x, W, b_lin, alpha, bias, dropout_p=0.0)
    jax.block_until_ready(fused_p0)
    # Looser tolerance: MXU matmul precision inside the kernel may differ from XLA's.
    assert jnp.allclose(fused_p0, ref_p0, atol=2e-2, rtol=2e-2), "fused p=0 mismatch"

    # --- training mode: p = 0.1; composed and fused paths share the bit-stream ---
    p = 0.1
    out_drop = residual_connection(x, sublayer, alpha, bias, dropout_p=p, rng_key=kdrop)
    fused_drop = residual_connection_fused_linear(x, W, b_lin, alpha, bias,
                                                  dropout_p=p, rng_key=kdrop)
    jax.block_until_ready((out_drop, fused_drop))
    assert bool(jnp.all(jnp.isfinite(out_drop)))
    assert jnp.allclose(out_drop, fused_drop, atol=2e-2, rtol=2e-2), \
        "fused vs composed dropout mismatch"

    print("KERNEL_OK")
</pallas_src>

<mosaic_0001>
module attributes {stable_mosaic.version = 11 : i64} {
  func.func @_layernorm_kernel(%arg0: i32, %arg1: memref<1xf32, #tpu.memory_space<smem>>, %arg2: memref<1xf32, #tpu.memory_space<smem>>, %arg3: memref<8x32xf32, #tpu.memory_space<vmem>>, %arg4: memref<8x32xf32, #tpu.memory_space<vmem>>) attributes {dimension_semantics = [#tpu.dimension_semantics<parallel>], iteration_bounds = array<i64: 2>, scalar_prefetch = 0 : i64, scratch_operands = 0 : i64, tpu.core_type = #tpu.core_type<tc>, window_params = [{transform_indices = @transform_0, window_bounds = array<i64: 1>}, {transform_indices = @transform_1, window_bounds = array<i64: 1>}, {transform_indices = @transform_2, window_bounds = array<i64: 8, 32>}, {transform_indices = @transform_3, window_bounds = array<i64: 8, 32>}]} {
    %c0 = arith.constant 0 : index
    %c0_0 = arith.constant 0 : index
    %0 = vector.load %arg3[%c0, %c0_0] : memref<8x32xf32, #tpu.memory_space<vmem>>, vector<8x32xf32>
    %c0_1 = arith.constant 0 : index
    %1 = memref.load %arg1[%c0_1] : memref<1xf32, #tpu.memory_space<smem>>
    %c0_2 = arith.constant 0 : index
    %2 = memref.load %arg2[%c0_2] : memref<1xf32, #tpu.memory_space<smem>>
    %cst = arith.constant dense<0.000000e+00> : vector<8xf32>
    %3 = vector.multi_reduction <add>, %0, %cst [1] : vector<8x32xf32> to vector<8xf32>
    %4 = vector.shape_cast %3 : vector<8xf32> to vector<8x1xf32>
    %cst_3 = arith.constant 3.200000e+01 : f32
    %5 = vector.broadcast %cst_3 : f32 to vector<8x1xf32>
    %6 = arith.divf %4, %5 : vector<8x1xf32>
    %7 = vector.broadcast %6 : vector<8x1xf32> to vector<8x32xf32>
    %8 = arith.subf %0, %7 : vector<8x32xf32>
    %9 = arith.mulf %8, %8 : vector<8x32xf32>
    %cst_4 = arith.constant dense<0.000000e+00> : vector<8xf32>
    %10 = vector.multi_reduction <add>, %9, %cst_4 [1] : vector<8x32xf32> to vector<8xf32>
    %11 = vector.shape_cast %10 : vector<8xf32> to vector<8x1xf32>
    %cst_5 = arith.constant 0.0322580636 : f32
    %12 = vector.broadcast %cst_5 : f32 to vector<8x1xf32>
    %13 = arith.mulf %11, %12 : vector<8x1xf32>
    %14 = math.sqrt %13 : vector<8x1xf32>
    %cst_6 = arith.constant 9.99999997E-7 : f32
    %15 = vector.broadcast %cst_6 : f32 to vector<8x1xf32>
    %16 = arith.addf %14, %15 : vector<8x1xf32>
    %cst_7 = arith.constant 1.000000e+00 : f32
    %17 = vector.broadcast %cst_7 : f32 to vector<8x1xf32>
    %18 = arith.divf %17, %16 : vector<8x1xf32>
    %19 = vector.broadcast %18 : vector<8x1xf32> to vector<8x32xf32>
    %20 = arith.mulf %8, %19 : vector<8x32xf32>
    %21 = vector.broadcast %1 : f32 to vector<8x32xf32>
    %22 = arith.mulf %21, %20 : vector<8x32xf32>
    %23 = vector.broadcast %2 : f32 to vector<8x32xf32>
    %24 = arith.addf %22, %23 : vector<8x32xf32>
    %c0_8 = arith.constant 0 : index
    %c0_9 = arith.constant 0 : index
    %25 = vector.load %arg4[%c0_8, %c0_9] : memref<8x32xf32, #tpu.memory_space<vmem>>, vector<8x32xf32>
    tpu.vector_store %arg4[%c0_8, %c0_9], %24 {strides = array<i32>} : memref<8x32xf32, #tpu.memory_space<vmem>>, vector<8x32xf32>,
    return
  }
  func.func @transform_0(%arg0: i32) -> i32 {
    %c0_i32 = arith.constant 0 : i32
    %c0_i32_0 = arith.constant 0 : i32
    return %c0_i32 : i32
  }
  func.func @transform_1(%arg0: i32) -> i32 {
    %c0_i32 = arith.constant 0 : i32
    %c0_i32_0 = arith.constant 0 : i32
    return %c0_i32 : i32
  }
  func.func @transform_2(%arg0: i32) -> (i32, i32) {
    %c0_i32 = arith.constant 0 : i32
    %c0_i32_0 = arith.constant 0 : i32
    return %arg0, %c0_i32 : i32, i32
  }
  func.func @transform_3(%arg0: i32) -> (i32, i32) {
    %c0_i32 = arith.constant 0 : i32
    %c0_i32_0 = arith.constant 0 : i32
    return %arg0, %c0_i32 : i32, i32
  }
}

</mosaic_0001>

<bundles_post_ra>
// kernel: tpu_custom_call.1
= control target key start
LH: loop header
LB: loop body
LE: loop exit
PB: predicated region body
PF: predicated region fallthrough
CT: control target
= control target key end

     0   :  { %s655_s0 = inlined_call_operand.<no memory space> [shape: f32[1], index: 0, kind: input, shape index: {}]   ;;  %s656_s1 = inlined_call_operand.<no memory space> [shape: f32[1], index: 1, kind: input, shape index: {}]   ;;  %s657_s2 = inlined_call_operand.hbm [shape: f32[16,32], index: 2, kind: input, shape index: {}]   ;;  %s658_s3 = inlined_call_operand.hbm [shape: f32[16,32], index: 3, kind: output, shape index: {}]  }
   0x1   :  { %8 = sst [smem:[#allocation2]] %s655_s0 }
   0x2   :  { %9 = sst [smem:[#allocation3]] %s656_s1 }
   0x3   :  { %10 = vsyncpa [#allocation5], 0 }
   0x4   :  { %12 = vsyncpa [#allocation5 + $0x1], 0 }
   0x5   :  { %13 = vsyncpa [#allocation6], 0 }
   0x6   :  { %15 = vsyncpa [#allocation6 + $0x1], 0  ;;  %s521_s16 = smov 0   ;;  %s523_s17 = smov 0  }
   0x7   :  { %s525_s18 = smov 0   ;;  %s527_s19 = smov 0  }
   0x8 LB: > { %s542_s0 = sadd.s32 4294967295, %s492_s19   ;;  %s331_s1 = sadd.s32 4294967294, %s492_s19   ;;  %s492_s19 = sphi %s527_s19, %s668_s19   ;;  %s488_s18 = sphi %s525_s18, %s667_s18   ;;  %s484_s17 = sphi %s523_s17, %s666_s17   ;;  %s480_s16 = sphi %s521_s16, %s665_s16  }
   0x9   : > { %s546_s20 = sadd.s32 1, %s492_s19   ;;  %s70_s21 = sadd.s32 1, %s488_s18 }
   0xa   : > { %s67_s22 = ssub.s32 %s492_s19, %s546_s20  ;;  %p77_p0 = scmp.ne.s32.totalorder %s488_s18, %s484_s17 }
   0xb   : > { %p68_p1 = scmp.eq.s32.totalorder %s67_s22, 0  ;;  %p78_p2 = scmp.eq.s32.totalorder %s492_s19, 0 }
   0xc   : > { %p83_p3 = scmp.ne.s32.totalorder %s484_s17, %s480_s16  ;;  %p84_p4 = scmp.eq.s32.totalorder %s542_s0, 0 }
   0xd   : > { %s558_s23 = scalar_select %p68_p1, %s488_s18, %s70_s21  }
   0xe   : > { %p560_p5 = por %p78_p2, %p77_p0  ;;  %p564_p6 = por %p84_p4, %p83_p3 }
   0xf   : > { %p107_p7 = scmp.eq.s32.totalorder %s542_s0, 1  ;;  %p113_p8 = scmp.eq.s32.totalorder %s331_s1, 1 }
  0x10   : > { %p355_p10 = scmp.lt.s32.totalorder %s492_s19, 2  ;;  %s139_s28 = sand.u32 1, %s488_s18  }
  0x11   : > { %p571_p11 = por %p107_p7, %p77_p0  ;;  %p575_p12 = por %p113_p8, %p83_p3 }
  0x12   : > { %s335_s29 = sshll.u32 %s492_s19, 3  ;;  %s334_s30 = sshll.u32 %s139_s28, 3 }
  0x13   : > { %s147_s6 = scalar_lea.hbm %s657_s2, %s335_s29  ;;  %s143_s8 = scalar_lea.vmem [#allocation4], %s334_s30 }
  0x14   : > { %s149_s7 = sshll.u32 %s147_s6, 4  ;;  %s151_s9 = sshll.u32 %s143_s8, 4  ;;  %s150_s7 = int_to_ptr.hbm [resolvable:$true] %s149_s7  ;;  %s152_s9 = int_to_ptr.vmem [resolvable:$true] %s151_s9 }
  0x15   : > { %p586_p13 = pnand %p355_p10, %p560_p5  ;;  %p336_p0 = scmp.ge.s32.totalorder %s492_s19, 1 }
  0x16   : > { %p156_p1 = scmp.lt.s32.totalorder %s492_s19, 3  ;;  %s140_s11 = scalar_lea.sflag [#allocation5], %s139_s28 }
  0x17   : > { %s396_s12 = sshra.s32 %s150_s7, 4  ;;  %p400_p3 = pneg %p586_p13  ;;  %s397_s12 = int_to_ptr.hbm [resolvable:$true] %s396_s12 }
  0x18   : > { %s398_s13 = scalar_lea.hbm %s397_s12, 8  ;;  %s403_s1 = scalar_lea.hbm %s657_s2, 16 }
  0x19   : > { %p399_p2 = scmp.ne.s32.totalorder %s397_s12, %s398_s13  ;;  %p404_p5 = scmp.lt.s32.totalorder %s397_s12, %s657_s2 }
  0x1a   : > { %p405_p8 = scmp.lt.s32.totalorder %s403_s1, %s398_s13 }
  0x1b   : > { %p401_p4 = pnand %p400_p3, %p399_p2 }
  0x1c   : > { %p406_p10 = por %p405_p8, %p404_p5 }
  0x1d   : > { %p402_p7 = pneg %p401_p4 }
  0x1f   : > { %p407_p9 = pnand %p406_p10, %p402_p7 }
  0x21   : > { %410 = shalt.err (!%p407_p9)
}
  0x22   : > { %350 = dma.hbm_to_vmem [thread:$0]  (!%p586_p13), %s150_s7, 128, %s152_s9, %s140_s11  }
  0x23   : > { %p157_p2 = pnand %p336_p0, %p156_p1 }
  0x24   : > { %s607_s24 = sand.u32 (!%p157_p2), 1, %s484_s17  }
  0x25   : > { %160 = sbr.rel (%p157_p2) target bundleno = 335 (0x14f), region = 32  ;;  %s337_s28 = sshll.u32 (!%p157_p2), %s607_s24, 3 }
  0x26   : > { %s163_s29 = scalar_lea.sflag (!%p157_p2), [#allocation5], %s607_s24  ;;  %s166_s30 = scalar_lea.vmem (!%p157_p2), [#allocation4], %s337_s28 }
  0x2a   : > { %471 = dma.done.wait (%p564_p6), %s163_s29, 128  }
  0x2b   : > { %473 = vsyncadd (%p564_p6), %s163_s29, 4294967168  ;;  %vm193_vm0 = vcmask 261120   ;;  %v190_v0 = vld [vmem:[%s166_s30] sm:$0xff]  ;;  %v494_v2 = vmov 32.0   ;;  %s191_s25 = sld [smem:[#allocation2]]  ;;  %s340_s5 = sshll.u32 %s542_s0, 3 }
  0x2c   : > { %v194_v1 = vsel %vm193_vm0, %v190_v0, 0.0  ;;  %390 = vrcp.f32 %v494_v2  ;;  %s192_s4 = sld [smem:[#allocation3]]  ;;  %s256_s8 = scalar_lea.hbm %s658_s3, %s340_s5 }
  0x2d   : > { %195 = vadd.xlane.f32.xlu0 %v194_v1  ;;  %s189_s9 = scalar_lea.vmem [#allocation7], %s337_s28  ;;  %s260_s0 = sshll.u32 %s256_s8, 4  ;;  %s261_s0 = int_to_ptr.hbm [resolvable:$true] %s260_s0 }
  0x2e   : > { %s258_s10 = sshll.u32 %s189_s9, 4  ;;  %s246_s11 = scalar_lea.sflag [#allocation6], %s607_s24  ;;  %s259_s10 = int_to_ptr.vmem [resolvable:$true] %s258_s10 }
  0x2f   : > { %s440_s12 = sshra.s32 %s261_s0, 4  ;;  %s446_s1 = scalar_lea.hbm %s658_s3, 16  ;;  %s441_s12 = int_to_ptr.hbm [resolvable:$true] %s440_s12 }
  0x30   : > { %s442_s13 = scalar_lea.hbm %s441_s12, 8  ;;  %p447_p0 = scmp.lt.s32.totalorder %s441_s12, %s658_s3 }
  0x31   : > { %v240_v36 = vstv %s191_s25  ;;  %p443_p6 = scmp.ne.s32.totalorder %s441_s12, %s442_s13  ;;  %p448_p1 = scmp.lt.s32.totalorder %s446_s1, %s442_s13 }
  0x32   : > { %v391_v3 = vpop.eup %390  ;;  %v242_v39 = vstv %s192_s4 }
  0x33   : > { %v198_v4 = vmul.f32 32.0, %v391_v3  ;;  %vm202_vm1 = vweird.f32 %v391_v3  ;;  %p444_p9 = pnand %p443_p6, %p571_p11  ;;  %p449_p3 = por %p448_p1, %p447_p0 }
  0x35   : > { %v199_v5 = vsub.f32 1.0, %v198_v4  ;;  %p445_p13 = pneg %p444_p9 }
  0x37   : > { %v200_v6 = vmul.f32 %v391_v3, %v199_v5  ;;  %p450_p4 = pnand %p449_p3, %p445_p13 }
  0x39   : > { %v201_v7 = vadd.f32 %v391_v3, %v200_v6 }
  0x3b   : > { %v203_v8 = vsel %vm202_vm1, %v391_v3, %v201_v7 }
  0xa0   : > { %v196_v9 = vpop.xlane.xlu0 %195 }
  0xa1   : > { %v204_v10 = vmul.f32 %v203_v8, %v196_v9 }
  0xa3   : > { %v205_v11 = vsub.f32 %v190_v0, %v204_v10 }
  0xa5   : > { %v206_v12 = vmul.f32 %v205_v11, %v205_v11 }
  0xa7   : > { %v207_v13 = vsel %vm193_vm0, %v206_v12, 0.0 }
  0xa8   : > { %208 = vadd.xlane.f32.xlu0 %v207_v13 }
 0x11b   : > { %v209_v14 = vpop.xlane.xlu0 %208 }
 0x11c   : > { %v210_v15 = vmul.f32 0.032258064, %v209_v14 }
 0x11e   : > { %392 = vrsqrt.f32 %v210_v15  ;;  %vm218_vm2 = vcmp.eq.f32.partialorder %v210_v15, inf  ;;  %v221_v23 = vand.u32 2147483648, %v210_v15  ;;  %vm220_vm3 = vcmp.eq.f32.partialorder %v210_v15, 0.0 }
 0x124   : > { %v393_v16 = vpop.eup %392 }
 0x125   : > { %v212_v17 = vmul.f32 %v393_v16, %v210_v15 }
 0x127   : > { %v213_v18 = vmul.f32 %v393_v16, %v212_v17 }
 0x129   : > { %v214_v19 = vmul.f32 0.5, %v213_v18 }
 0x12b   : > { %v215_v20 = vsub.f32 1.5, %v214_v19 }
 0x12d   : > { %v216_v21 = vmul.f32 %v393_v16, %v215_v20 }
 0x12f   : > { %v217_v22 = vmul.f32 %v216_v21, %v210_v15 }
 0x131   : > { %v219_v24 = vsel %vm218_vm2, %v210_v15, %v217_v22 }
 0x132   : > { %v222_v25 = vsel %vm220_vm3, %v221_v23, %v219_v24 }
 0x133   : > { %v223_v26 = vadd.f32 1e-06, %v222_v25 }
 0x135   : > { %394 = vrcp.f32 %v223_v26  ;;  %v235_v30 = vand.u32 2147483648, %v223_v26  ;;  %v233_v32 = vand.u32 2147483647, %v223_v26  ;;  %vm229_vm5 = vweird.f32 %v223_v26 }
 0x137   : > { %v236_v34 = vor.u32 1.1754944e-38, %v235_v30  ;;  %vm234_vm7 = vcmp.eq.f32.partialorder %v233_v32, 8.507059e+37 }
 0x13b   : > { %v395_v27 = vpop.eup %394 }
 0x13c   : > { %v225_v28 = vmul.f32 %v395_v27, %v223_v26  ;;  %vm230_vm4 = vweird.f32 %v395_v27 }
 0x13d   : > { %vm231_vm6 = vmor %vm229_vm5, %vm230_vm4 }
 0x13e   : > { %v226_v29 = vsub.f32 1.0, %v225_v28 }
 0x140   : > { %v227_v31 = vmul.f32 %v395_v27, %v226_v29 }
 0x142   : > { %v228_v33 = vadd.f32 %v395_v27, %v227_v31 }
 0x144   : > { %v232_v35 = vsel %vm231_vm6, %v395_v27, %v228_v33 }
 0x145   : > { %v237_v37 = vsel %vm234_vm7, %v236_v34, %v232_v35 }
 0x146   : > { %v239_v38 = vmul.f32 %v237_v37, %v205_v11 }
 0x148   : > { %v241_v40 = vmul.f32 %v240_v36, %v239_v38 }
 0x14a   : > { %v243_v41 = vadd.f32 %v242_v39, %v241_v40 }
 0x14c   : > { %244 = vst.msk [vmem:[%s189_s9] sm:$0xff] %vm193_vm0, %v243_v41 }
 0x14d   : > { %453 = shalt.err (!%p450_p4)
}
 0x14e   : > { %345 = dma.vmem_to_hbm [thread:$0]  (%p571_p11), %s259_s10, 128, %s261_s0, %s246_s11  }
 0x14f PF: > { %s272_s24 = sand.u32 1, %s480_s16   ;;  %p664_p7 = scmp.ge.s32.totalorder %s492_s19, 2 }
 0x150   : > { %s273_s28 = scalar_lea.sflag [#allocation6], %s272_s24 }
 0x151   : > { %p352_p5 = pnand %p664_p7, %p575_p12 }
 0x153   : > { %p353_p8 = pneg %p352_p5 }
 0x155   : > { %475 = dma.done.wait (%p353_p8), %s273_s28, 128  }
 0x156   : > { %477 = vsyncadd (%p353_p8), %s273_s28, 4294967168  ;;  %p18_p10 = scmp.ge.s32.totalorder %s546_s20, 4   ;;  %s665_s16 = smov %s484_s17 }
 0x157   : > { %s666_s17 = smov %s488_s18  ;;  %s667_s18 = smov %s558_s23 }
 0x158   : > { %s668_s19 = smov %s546_s20  ;;  %20 = sbr.rel (!%p18_p10) target bundleno = 8 (0x8), region = 77 }
 0x15d   :  { %279 = vsyncpa [#allocation5], 1 }
 0x15e   :  { %281 = vsyncpa [#allocation5 + $0x1], 1 }
 0x15f   :  { %282 = vsyncpa [#allocation6], 1 }
 0x160   :  { %284 = vsyncpa [#allocation6 + $0x1], 1 }

</bundles_post_ra>
